<compile_context>
chip_gen: v5e
topology: v5e:2x2
jax: 0.10.0
libtpu: 0.0.40
codegen_flags: <defaults>
</compile_context>

<pallas_src>
import functools

import jax
import jax.numpy as jnp
from jax import lax
from jax.experimental import pallas as pl
from jax.experimental.pallas import tpu as pltpu

LS = 40  # hidden width (`ls = 40` in the PyTorch module)


def _round_up(a, m):
    return -(-a // m) * m


def _make_kernel(nc, chunk):
    """Build a kernel processing `nc` lane-chunks of `chunk` samples per grid step."""

    def mlp_kernel(x_ref, w1_ref, b1_ref, wh_ref, bh_ref, w5_ref, b5_ref, o_ref):
        # Tiny weights (<25 KiB total), VMEM resident across the whole grid.
        w1 = w1_ref[...]                     # (40, 1)
        b1 = b1_ref[...]                     # (40, 1)
        w5 = w5_ref[...]                     # (40, 1)  == W5^T
        b5 = b5_ref[...]                     # (1, 1)

        def body(c, carry):
            start = pl.multiple_of(c * chunk, 128)
            x = x_ref[:, pl.ds(start, chunk)]                  # (1, chunk)

            # Layer 1 (in_features=1): K=1 matmul is degenerate -> VPU outer
            # product, keep it off the MXU.
            h = jnp.tanh(w1 * x + b1)                          # (40, chunk)

            # Layers 2-4: (40,40) @ (40,chunk) on the MXU, f32 accumulation.
            # TODO(synk): bf16 tanh/matmul operands (v6e/v7x EUP/MXU speedup)
            # intentionally not used to stay within the 1e-4 accuracy budget.
            for i in range(3):
                h = jnp.tanh(
                    jnp.dot(wh_ref[i], h, preferred_element_type=jnp.float32)
                    + bh_ref[i])                                # (40, chunk)

            # Layer 5 (out_features=1): M=1 matmul is degenerate ->
            # multiply + sublane reduce; lane-dense (1, chunk) store.
            y = jnp.sum(w5 * h, axis=0, keepdims=True) + b5     # (1, chunk)
            o_ref[:, pl.ds(start, chunk)] = y.astype(o_ref.dtype)
            return carry

        lax.fori_loop(0, nc, body, 0, unroll=True)

    return mlp_kernel


@functools.partial(jax.jit, static_argnames=("chunk", "chunks_per_step"))
def mlp_forward(x, params, *, chunk=512, chunks_per_step=4):
    """x: (B, 1) float32. params: [(W, b)] in PyTorch layout (W:(out,in), b:(out,)).
    Returns (B, 1) float32."""
    (w1, b1), (w2, b2), (w3, b3), (w4, b4), (w5, b5) = params
    B = x.shape[0]
    assert chunk % 128 == 0, "chunk must be a multiple of 128 (lane constraint)"

    # --- choose lane tiling (all trace-time Python on static shapes) ---
    Bc = _round_up(B, 128)                 # minimum lane padding
    chunk_eff = Bc if Bc <= chunk else chunk
    total_chunks = -(-Bc // chunk_eff)
    nc = min(chunks_per_step, total_chunks)
    if total_chunks >= 2:
        # v7x has 2 TensorCores and the grid axis is what gets sharded across
        # them: keep at least 2 grid steps whenever there is enough work.
        nc = min(nc, max(1, total_chunks // 2))
    block_b = nc * chunk_eff               # lanes per grid step (mult of 128)
    n_tiles = -(-Bc // block_b)
    Bp = n_tiles * block_b

    # Batch on the lane (last) dim; pad stays inside this jit so XLA fuses it
    # (no separate materialized pad pass when B already fits).
    x_row = x[:, 0].astype(jnp.float32).reshape(1, B)
    x_t = x_row if Bp == B else jnp.pad(x_row, ((0, 0), (0, Bp - B)))

    # Repack parameters for the transposed layout (y^T = W x^T + b).
    w1c = w1.reshape(LS, 1).astype(jnp.float32)                 # (40, 1)
    b1c = b1.reshape(LS, 1).astype(jnp.float32)                 # (40, 1)
    wh = jnp.stack([w2, w3, w4]).astype(jnp.float32)            # (3, 40, 40)
    bh = jnp.stack([b2, b3, b4]).reshape(3, LS, 1).astype(jnp.float32)
    w5c = w5.reshape(LS, 1).astype(jnp.float32)                 # (1,40) -> (40,1) == W5^T
    b5c = b5.reshape(1, 1).astype(jnp.float32)

    def full_spec(shape):
        nd = len(shape)
        return pl.BlockSpec(shape, lambda i, _nd=nd: (0,) * _nd)   # grid-resident

    out_pad = pl.pallas_call(
        _make_kernel(nc, chunk_eff),
        out_shape=jax.ShapeDtypeStruct((1, Bp), jnp.float32),
        grid_spec=pltpu.PrefetchScalarGridSpec(
            num_scalar_prefetch=0,
            grid=(n_tiles,),
            in_specs=[
                pl.BlockSpec((1, block_b), lambda i: (0, i)),    # x^T, batch on lanes
                full_spec(w1c.shape), full_spec(b1c.shape),
                full_spec(wh.shape), full_spec(bh.shape),
                full_spec(w5c.shape), full_spec(b5c.shape),
            ],
            out_specs=pl.BlockSpec((1, block_b), lambda i: (0, i)),
        ),
        compiler_params=pltpu.CompilerParams(
            dimension_semantics=("parallel",),        # megacore split on v7x
        ),
    )(x_t, w1c, b1c, wh, bh, w5c, b5c)

    return out_pad[0, :B].reshape(B, 1)


def init_params(key):
    """Deterministic init mimicking PyTorch Linear defaults, PyTorch layout."""
    dims = [(1, LS), (LS, LS), (LS, LS), (LS, LS), (LS, 1)]
    params = []
    for fan_in, fan_out in dims:
        kw, kb, key = jax.random.split(key, 3)
        bound = 1.0 / jnp.sqrt(float(fan_in))
        w = jax.random.uniform(kw, (fan_out, fan_in), jnp.float32, -bound, bound)
        b = jax.random.uniform(kb, (fan_out,), jnp.float32, -bound, bound)
        params.append((w, b))
    return params


def mlp_reference(x, params):
    h = x
    for i, (w, b) in enumerate(params):
        h = h @ w.T + b        # PyTorch nn.Linear semantics
        if i < len(params) - 1:
            h = jnp.tanh(h)
    return h


if __name__ == "__main__":
    key = jax.random.PRNGKey(0)
    kx, kp = jax.random.split(key)
    params = init_params(kp)

    # Primary small-shape check (matches module spec: x is (B, 1)).
    B = 8
    x = jax.random.normal(kx, (B, 1), dtype=jnp.float32)
    out = jax.block_until_ready(mlp_forward(x, params))
    ref = mlp_reference(x, params)
    assert out.shape == (B, 1)
    assert jnp.allclose(out, ref, atol=1e-4, rtol=1e-4)

    # Secondary check exercising the multi-chunk / multi-grid-step path.
    B2 = 2048
    x2 = jax.random.normal(kx, (B2, 1), dtype=jnp.float32)
    out2 = jax.block_until_ready(mlp_forward(x2, params))
    ref2 = mlp_reference(x2, params)
    assert out2.shape == (B2, 1)
    assert jnp.allclose(out2, ref2, atol=1e-4, rtol=1e-4)

    print("KERNEL_OK")
</pallas_src>

<mosaic_0001>
module attributes {stable_mosaic.version = 11 : i64} {
  func.func @mlp_kernel(%arg0: i32, %arg1: memref<1x128xf32, #tpu.memory_space<vmem>>, %arg2: memref<40x1xf32, #tpu.memory_space<vmem>>, %arg3: memref<40x1xf32, #tpu.memory_space<vmem>>, %arg4: memref<3x40x40xf32, #tpu.memory_space<vmem>>, %arg5: memref<3x40x1xf32, #tpu.memory_space<vmem>>, %arg6: memref<40x1xf32, #tpu.memory_space<vmem>>, %arg7: memref<1x1xf32, #tpu.memory_space<vmem>>, %arg8: memref<1x128xf32, #tpu.memory_space<vmem>>) attributes {dimension_semantics = [#tpu.dimension_semantics<parallel>], iteration_bounds = array<i64: 1>, scalar_prefetch = 0 : i64, scratch_operands = 0 : i64, tpu.core_type = #tpu.core_type<tc>, window_params = [{transform_indices = @transform_0, window_bounds = array<i64: 1, 128>}, {pipeline_mode = #tpu.pipeline_mode<synchronous>, transform_indices = @transform_1, window_bounds = array<i64: 40, 1>}, {pipeline_mode = #tpu.pipeline_mode<synchronous>, transform_indices = @transform_2, window_bounds = array<i64: 40, 1>}, {pipeline_mode = #tpu.pipeline_mode<synchronous>, transform_indices = @transform_3, window_bounds = array<i64: 3, 40, 40>}, {pipeline_mode = #tpu.pipeline_mode<synchronous>, transform_indices = @transform_4, window_bounds = array<i64: 3, 40, 1>}, {pipeline_mode = #tpu.pipeline_mode<synchronous>, transform_indices = @transform_5, window_bounds = array<i64: 40, 1>}, {pipeline_mode = #tpu.pipeline_mode<synchronous>, transform_indices = @transform_6, window_bounds = array<i64: 1, 1>}, {transform_indices = @transform_7, window_bounds = array<i64: 1, 128>}]} {
    %c0 = arith.constant 0 : index
    %c0_0 = arith.constant 0 : index
    %0 = vector.load %arg2[%c0, %c0_0] : memref<40x1xf32, #tpu.memory_space<vmem>>, vector<40x1xf32>
    %c0_1 = arith.constant 0 : index
    %c0_2 = arith.constant 0 : index
    %1 = vector.load %arg3[%c0_1, %c0_2] : memref<40x1xf32, #tpu.memory_space<vmem>>, vector<40x1xf32>
    %c0_3 = arith.constant 0 : index
    %c0_4 = arith.constant 0 : index
    %2 = vector.load %arg6[%c0_3, %c0_4] : memref<40x1xf32, #tpu.memory_space<vmem>>, vector<40x1xf32>
    %c0_5 = arith.constant 0 : index
    %c0_6 = arith.constant 0 : index
    %3 = vector.load %arg7[%c0_5, %c0_6] : memref<1x1xf32, #tpu.memory_space<vmem>>, vector<1x1xf32>
    %c0_i32 = arith.constant 0 : i32
    %c128_i32 = arith.constant 128 : i32
    %4 = arith.muli %c0_i32, %c128_i32 : i32
    %5 = tpu.assume_multiple %4, 128 : i32
    %c0_7 = arith.constant 0 : index
    %6 = arith.index_cast %5 : i32 to index
    %7 = vector.load %arg1[%c0_7, %6] : memref<1x128xf32, #tpu.memory_space<vmem>>, vector<1x128xf32>
    %8 = vector.broadcast %0 : vector<40x1xf32> to vector<40x128xf32>
    %9 = vector.broadcast %7 : vector<1x128xf32> to vector<40x128xf32>
    %10 = arith.mulf %8, %9 : vector<40x128xf32>
    %11 = vector.broadcast %1 : vector<40x1xf32> to vector<40x128xf32>
    %12 = arith.addf %10, %11 : vector<40x128xf32>
    %13 = math.tanh %12 : vector<40x128xf32>
    %c0_8 = arith.constant 0 : index
    %c0_9 = arith.constant 0 : index
    %c0_10 = arith.constant 0 : index
    %14 = vector.load %arg4[%c0_8, %c0_9, %c0_10] : memref<3x40x40xf32, #tpu.memory_space<vmem>>, vector<1x40x40xf32>
    %15 = vector.shape_cast %14 : vector<1x40x40xf32> to vector<40x40xf32>
    %cst = arith.constant dense<0.000000e+00> : vector<40x128xf32>
    %16 = tpu.matmul %15, %13, %cst {dimension_numbers = #tpu.dot_dimension_numbers<[1], [0], [0], [1], [0, 0, 1, 1], [], []>} : vector<40x40xf32>, vector<40x128xf32>, vector<40x128xf32> -> vector<40x128xf32>
    %c0_11 = arith.constant 0 : index
    %c0_12 = arith.constant 0 : index
    %c0_13 = arith.constant 0 : index
    %17 = vector.load %arg5[%c0_11, %c0_12, %c0_13] : memref<3x40x1xf32, #tpu.memory_space<vmem>>, vector<1x40x1xf32>
    %18 = vector.shape_cast %17 : vector<1x40x1xf32> to vector<40x1xf32>
    %19 = vector.broadcast %18 : vector<40x1xf32> to vector<40x128xf32>
    %20 = arith.addf %16, %19 : vector<40x128xf32>
    %21 = math.tanh %20 : vector<40x128xf32>
    %c1 = arith.constant 1 : index
    %c0_14 = arith.constant 0 : index
    %c0_15 = arith.constant 0 : index
    %22 = vector.load %arg4[%c1, %c0_14, %c0_15] : memref<3x40x40xf32, #tpu.memory_space<vmem>>, vector<1x40x40xf32>
    %23 = vector.shape_cast %22 : vector<1x40x40xf32> to vector<40x40xf32>
    %cst_16 = arith.constant dense<0.000000e+00> : vector<40x128xf32>
    %24 = tpu.matmul %23, %21, %cst_16 {dimension_numbers = #tpu.dot_dimension_numbers<[1], [0], [0], [1], [0, 0, 1, 1], [], []>} : vector<40x40xf32>, vector<40x128xf32>, vector<40x128xf32> -> vector<40x128xf32>
    %c1_17 = arith.constant 1 : index
    %c0_18 = arith.constant 0 : index
    %c0_19 = arith.constant 0 : index
    %25 = vector.load %arg5[%c1_17, %c0_18, %c0_19] : memref<3x40x1xf32, #tpu.memory_space<vmem>>, vector<1x40x1xf32>
    %26 = vector.shape_cast %25 : vector<1x40x1xf32> to vector<40x1xf32>
    %27 = vector.broadcast %26 : vector<40x1xf32> to vector<40x128xf32>
    %28 = arith.addf %24, %27 : vector<40x128xf32>
    %29 = math.tanh %28 : vector<40x128xf32>
    %c2 = arith.constant 2 : index
    %c0_20 = arith.constant 0 : index
    %c0_21 = arith.constant 0 : index
    %30 = vector.load %arg4[%c2, %c0_20, %c0_21] : memref<3x40x40xf32, #tpu.memory_space<vmem>>, vector<1x40x40xf32>
    %31 = vector.shape_cast %30 : vector<1x40x40xf32> to vector<40x40xf32>
    %cst_22 = arith.constant dense<0.000000e+00> : vector<40x128xf32>
    %32 = tpu.matmul %31, %29, %cst_22 {dimension_numbers = #tpu.dot_dimension_numbers<[1], [0], [0], [1], [0, 0, 1, 1], [], []>} : vector<40x40xf32>, vector<40x128xf32>, vector<40x128xf32> -> vector<40x128xf32>
    %c2_23 = arith.constant 2 : index
    %c0_24 = arith.constant 0 : index
    %c0_25 = arith.constant 0 : index
    %33 = vector.load %arg5[%c2_23, %c0_24, %c0_25] : memref<3x40x1xf32, #tpu.memory_space<vmem>>, vector<1x40x1xf32>
    %34 = vector.shape_cast %33 : vector<1x40x1xf32> to vector<40x1xf32>
    %35 = vector.broadcast %34 : vector<40x1xf32> to vector<40x128xf32>
    %36 = arith.addf %32, %35 : vector<40x128xf32>
    %37 = math.tanh %36 : vector<40x128xf32>
    %38 = vector.broadcast %2 : vector<40x1xf32> to vector<40x128xf32>
    %39 = arith.mulf %38, %37 : vector<40x128xf32>
    %cst_26 = arith.constant dense<0.000000e+00> : vector<128xf32>
    %40 = vector.multi_reduction <add>, %39, %cst_26 [0] : vector<40x128xf32> to vector<128xf32>
    %41 = vector.shape_cast %40 : vector<128xf32> to vector<1x128xf32>
    %42 = vector.broadcast %3 : vector<1x1xf32> to vector<1x128xf32>
    %43 = arith.addf %41, %42 : vector<1x128xf32>
    %c0_27 = arith.constant 0 : index
    %44 = arith.index_cast %5 : i32 to index
    %45 = vector.load %arg8[%c0_27, %44] : memref<1x128xf32, #tpu.memory_space<vmem>>, vector<1x128xf32>
    tpu.vector_store %arg8[%c0_27, %44], %43 {strides = array<i32>} : memref<1x128xf32, #tpu.memory_space<vmem>>, vector<1x128xf32>,
    %c1_i32 = arith.constant 1 : i32
    return
  }
  func.func @transform_0(%arg0: i32) -> (i32, i32) {
    %c0_i32 = arith.constant 0 : i32
    %c0_i32_0 = arith.constant 0 : i32
    return %c0_i32, %arg0 : i32, i32
  }
  func.func @transform_1(%arg0: i32) -> (i32, i32) {
    %c0_i32 = arith.constant 0 : i32
    %c0_i32_0 = arith.constant 0 : i32
    %c0_i32_1 = arith.constant 0 : i32
    return %c0_i32, %c0_i32_0 : i32, i32
  }
  func.func @transform_2(%arg0: i32) -> (i32, i32) {
    %c0_i32 = arith.constant 0 : i32
    %c0_i32_0 = arith.constant 0 : i32
    %c0_i32_1 = arith.constant 0 : i32
    return %c0_i32, %c0_i32_0 : i32, i32
  }
  func.func @transform_3(%arg0: i32) -> (i32, i32, i32) {
    %c0_i32 = arith.constant 0 : i32
    %c0_i32_0 = arith.constant 0 : i32
    %c0_i32_1 = arith.constant 0 : i32
    %c0_i32_2 = arith.constant 0 : i32
    return %c0_i32, %c0_i32_0, %c0_i32_1 : i32, i32, i32
  }
  func.func @transform_4(%arg0: i32) -> (i32, i32, i32) {
    %c0_i32 = arith.constant 0 : i32
    %c0_i32_0 = arith.constant 0 : i32
    %c0_i32_1 = arith.constant 0 : i32
    %c0_i32_2 = arith.constant 0 : i32
    return %c0_i32, %c0_i32_0, %c0_i32_1 : i32, i32, i32
  }
  func.func @transform_5(%arg0: i32) -> (i32, i32) {
    %c0_i32 = arith.constant 0 : i32
    %c0_i32_0 = arith.constant 0 : i32
    %c0_i32_1 = arith.constant 0 : i32
    return %c0_i32, %c0_i32_0 : i32, i32
  }
  func.func @transform_6(%arg0: i32) -> (i32, i32) {
    %c0_i32 = arith.constant 0 : i32
    %c0_i32_0 = arith.constant 0 : i32
    %c0_i32_1 = arith.constant 0 : i32
    return %c0_i32, %c0_i32_0 : i32, i32
  }
  func.func @transform_7(%arg0: i32) -> (i32, i32) {
    %c0_i32 = arith.constant 0 : i32
    %c0_i32_0 = arith.constant 0 : i32
    return %c0_i32, %arg0 : i32, i32
  }
}

</mosaic_0001>

<bundles_post_ra>
// kernel: mlp_forward.1
= control target key start
LH: loop header
LB: loop body
LE: loop exit
PB: predicated region body
PF: predicated region fallthrough
CT: control target
= control target key end

     0   :  { %v526_v0 = vmov 0   ;;  %vm148_vm0 = vcmask 326656   ;;  %s726_s2 = inlined_call_operand.vmem [shape: f32[40,1], index: 2, kind: input, shape index: {}]   ;;  %s727_s1 = inlined_call_operand.vmem [shape: f32[40,1], index: 1, kind: input, shape index: {}]   ;;  %s728_s0 = inlined_call_operand.vmem [shape: f32[1,128], index: 0, kind: input, shape index: {}]   ;;  %s729_s4 = inlined_call_operand.vmem [shape: f32[3,40,1], index: 4, kind: input, shape index: {}]   ;;  %s730_s6 = inlined_call_operand.<no memory space> [shape: f32[1,1], index: 6, kind: input, shape index: {}]   ;;  %s731_s5 = inlined_call_operand.vmem [shape: f32[40,1], index: 5, kind: input, shape index: {}]   ;;  %s732_s3 = inlined_call_operand.vmem [shape: f32[3,40,40], index: 3, kind: input, shape index: {}]   ;;  %s733_s7 = inlined_call_operand.vmem [shape: f32[1,128], index: 7, kind: output, shape index: {}]  }
   0x1   :  { %484 = vset.pattern.permute.xlu2 %v526_v0  ;;  %483 = vset.pattern.permute.xlu1 %v526_v0  ;;  %v37_v1 = vld [vmem:[%s726_s2 + $0x20] sm:$0xff]  ;;  %v36_v2 = vld [vmem:[%s726_s2 + $0x18] sm:$0xff]  ;;  %v30_v4 = vld [vmem:[%s727_s1 + $0x10] sm:$0xff]  ;;  %v12_v19 = vstv %s730_s6 }
   0x2   :  { %v32_v3 = vld [vmem:[%s727_s1 + $0x20] sm:$0xff]  ;;  %482 = vset.pattern.permute.xlu0 %v526_v0  ;;  %100 = vperm.xlu1 %483, %v37_v1   ;;  %v31_v5 = vld [vmem:[%s727_s1 + $0x18] sm:$0xff]  ;;  %v29_v6 = vld [vmem:[%s727_s1 + $0x8] sm:$0xff]  ;;  %13 = vst [vmem:[#allocation2] sm:$0x1] %v12_v19 }
   0x3   :  { %95 = vperm.xlu2 %484, %v36_v2   ;;  %67 = vperm.xlu0 %482, %v32_v3   ;;  %v28_v7 = vld [vmem:[%s727_s1] sm:$0xff]  ;;  %v35_v8 = vld [vmem:[%s726_s2 + $0x10] sm:$0xff]  ;;  %v34_v9 = vld [vmem:[%s726_s2 + $0x8] sm:$0xff] }
   0x4   :  { %v122_v10 = vld [vmem:[%s729_s4 + $0x20] sm:$0xff]  ;;  %v121_v12 = vld [vmem:[%s729_s4 + $0x18] sm:$0xff]  ;;  %v119_v13 = vld [vmem:[%s729_s4 + $0x8] sm:$0xff] }
   0x5   :  { %v33_v11 = vld [vmem:[%s726_s2] sm:$0xff]  ;;  %v120_v14 = vld [vmem:[%s729_s4 + $0x10] sm:$0xff]  ;;  %v445_v17 = vld [vmem:[%s729_s4 + $0x48] sm:$0xff] }
   0x6   :  { %v118_v15 = vld [vmem:[%s729_s4] sm:$0xff]  ;;  %v443_v18 = vld [vmem:[%s729_s4 + $0x38] sm:$0xff]  ;;  %v441_v20 = vld [vmem:[%s729_s4 + $0x28] sm:$0xff] }
   0x7   :  { %v444_v16 = vld [vmem:[%s729_s4 + $0x40] sm:$0xff]  ;;  %v442_v21 = vld [vmem:[%s729_s4 + $0x30] sm:$0xff]  ;;  %v457_v24 = vld [vmem:[%s729_s4 + $0x58] sm:$0xff] }
   0x8   :  { %v456_v22 = vld [vmem:[%s729_s4 + $0x50] sm:$0xff]  ;;  %v458_v23 = vld [vmem:[%s729_s4 + $0x60] sm:$0xff]  ;;  %v459_v25 = vld [vmem:[%s729_s4 + $0x68] sm:$0xff] }
   0x9   :  { %v38_v26 = vld [vmem:[%s731_s5] sm:$0xff]  ;;  %v460_v27 = vld [vmem:[%s729_s4 + $0x70] sm:$0xff]  ;;  %v39_v28 = vld [vmem:[%s731_s5 + $0x8] sm:$0xff] }
   0xa   :  { %57 = vperm.xlu1 %483, %v30_v4   ;;  %v41_v29 = vld [vmem:[%s731_s5 + $0x18] sm:$0xff]  ;;  %v40_v30 = vld [vmem:[%s731_s5 + $0x10] sm:$0xff]  ;;  %v42_v31 = vld [vmem:[%s731_s5 + $0x20] sm:$0xff] }
   0xb   :  { %62 = vperm.xlu0 %482, %v31_v5   ;;  %52 = vperm.xlu2 %484, %v29_v6   ;;  %v43_v32 = vld [vmem:[#allocation2] sm:$0x1]  ;;  %v114_v59 = vld [vmem:[%s732_s3 + $0x8] sm:$0xff]  ;;  %v115_v61 = vld [vmem:[%s732_s3 + $0x10] sm:$0xff] }
   0xc   :  { %v485_v34 = vld [vmem:[%s728_s0] ss:$0 sm:$0xff]  ;;  %v116_v62 = vld [vmem:[%s732_s3 + $0x18] sm:$0xff]  ;;  %v436_v19 = vld [vmem:[%s732_s3 + $0x28] sm:$0xff] }
   0xd   :  { %v113_v58 = vld [vmem:[%s732_s3] sm:$0xff] }
   0xe   :  { %v117_v63 = vld [vmem:[%s732_s3 + $0x20] sm:$0xff] }
  0x12   :  { %47 = vperm.xlu1 %483, %v28_v7  }
  0x13   :  { %90 = vperm.xlu0 %482, %v35_v8   ;;  %85 = vperm.xlu2 %484, %v34_v9  }
  0x1a   :  { %145 = vperm.xlu1 %483, %v122_v10  }
  0x1b   :  { %80 = vperm.xlu0 %482, %v33_v11   ;;  %140 = vperm.xlu2 %484, %v121_v12  }
  0x22   :  { %130 = vperm.xlu1 %483, %v119_v13  }
  0x23   :  { %135 = vperm.xlu0 %482, %v120_v14   ;;  %125 = vperm.xlu2 %484, %v118_v15  }
  0x2a   :  { %230 = vperm.xlu1 %483, %v444_v16  }
  0x2b   :  { %235 = vperm.xlu0 %482, %v445_v17   ;;  %225 = vperm.xlu2 %484, %v443_v18  }
  0x32   :  { %215 = vperm.xlu1 %483, %v441_v20   ;;  %v437_v20 = vld [vmem:[%s732_s3 + $0x30] sm:$0xff] }
  0x33   :  { %220 = vperm.xlu0 %482, %v442_v21   ;;  %304 = vperm.xlu2 %484, %v456_v22   ;;  %v438_v22 = vld [vmem:[%s732_s3 + $0x38] sm:$0xff] }
  0x3a   :  { %314 = vperm.xlu1 %483, %v458_v23   ;;  %v439_v23 = vld [vmem:[%s732_s3 + $0x40] sm:$0xff] }
  0x3b   :  { %309 = vperm.xlu0 %482, %v457_v24   ;;  %319 = vperm.xlu2 %484, %v459_v25   ;;  %v440_v24 = vld [vmem:[%s732_s3 + $0x48] sm:$0xff] }
  0x42   :  { %381 = vperm.xlu1 %483, %v38_v26  }
  0x43   :  { %324 = vperm.xlu0 %482, %v460_v27   ;;  %386 = vperm.xlu2 %484, %v39_v28  }
  0x4a   :  { %396 = vperm.xlu1 %483, %v41_v29  }
  0x4b   :  { %391 = vperm.xlu0 %482, %v40_v30   ;;  %401 = vperm.xlu2 %484, %v42_v31  }
  0x53   :  { %421 = vperm.xlu0 %482, %v43_v32  }
  0x5d   :  { %v96_v33 = vpop.permute.xlu2 %95 }
  0x65   :  { %v53_v39 = vpop.permute.xlu2 %52 }
  0x66   :  { %v74_v45 = vmul.f32 %v485_v34, %v53_v39 }
  0x6d   :  { %v86_v47 = vpop.permute.xlu2 %85 }
  0x6e   :  { %v104_v49 = vadd.f32 %v86_v47, %v74_v45  ;;  %v452_v45 = vld [vmem:[%s732_s3 + $0x58] sm:$0xff]  ;;  %v453_v47 = vld [vmem:[%s732_s3 + $0x60] sm:$0xff] }
  0x74   :  { %v101_v35 = vpop.permute.xlu1 %100 }
  0x75   :  { %v68_v36 = vpop.permute.xlu0 %67  ;;  %v141_v4 = vpop.permute.xlu2 %140 }
  0x76   :  { %v77_v37 = vmul.f32 %v485_v34, %v68_v36 }
  0x78   :  { %v107_v38 = vadd.f32 %v101_v35, %v77_v37 }
  0x7a   :  { %486 = vtanh.f32 %v107_v38 }
  0x7c   :  { %v58_v42 = vpop.permute.xlu1 %57 }
  0x7d   :  { %v63_v40 = vpop.permute.xlu0 %62  ;;  %v75_v46 = vmul.f32 %v485_v34, %v58_v42  ;;  %v126_v13 = vpop.permute.xlu2 %125 }
  0x7e   :  { %v76_v41 = vmul.f32 %v485_v34, %v63_v40 }
  0x80   :  { %v487_v43 = vpop.eup %486  ;;  %v106_v44 = vadd.f32 %v96_v33, %v76_v41 }
  0x81   :  { %175 = vmatpush.msra.mxu0 %v487_v43  ;;  %466 = vmatpush.msra.mxu3 %v487_v43 }
  0x82   :  { %488 = vtanh.f32 %v106_v44  ;;  %v451_v44 = vld [vmem:[%s732_s3 + $0x50] sm:$0xff] }
  0x84   :  { %v48_v52 = vpop.permute.xlu1 %47 }
  0x85   :  { %v91_v48 = vpop.permute.xlu0 %90  ;;  %v73_v53 = vmul.f32 %v485_v34, %v48_v52  ;;  %v226_v33 = vpop.permute.xlu2 %225 }
  0x86   :  { %v105_v50 = vadd.f32 %v91_v48, %v75_v46  ;;  %v454_v48 = vld [vmem:[%s732_s3 + $0x68] sm:$0xff] }
  0x88   :  { %v489_v51 = vpop.eup %488  ;;  %490 = vtanh.f32 %v105_v50 }
  0x89   :  { %176 = vmatpush.msra.mxu0 %v489_v51  ;;  %467 = vmatpush.msra.mxu3 %v489_v51  ;;  %492 = vtanh.f32 %v104_v49  ;;  %v455_v49 = vld [vmem:[%s732_s3 + $0x70] sm:$0xff] }
  0x8c   :  { %v146_v3 = vpop.permute.xlu1 %145 }
  0x8d   :  { %v81_v54 = vpop.permute.xlu0 %80  ;;  %v305_v51 = vpop.permute.xlu2 %304 }
  0x8e   :  { %v491_v55 = vpop.eup %490  ;;  %v103_v56 = vadd.f32 %v81_v54, %v73_v53 }
  0x8f   :  { %177 = vmatpush.msra.mxu0 %v491_v55  ;;  %468 = vmatpush.msra.mxu3 %v491_v55  ;;  %v493_v57 = vpop.eup %492 }
  0x90   :  { %494 = vtanh.f32 %v103_v56 }
  0x91   :  { %178 = vmatpush.msra.mxu0 %v493_v57  ;;  %469 = vmatpush.msra.mxu3 %v493_v57 }
  0x94   :  { %v131_v10 = vpop.permute.xlu1 %130 }
  0x95   :  { %v136_v8 = vpop.permute.xlu0 %135  ;;  %v320_v56 = vpop.permute.xlu2 %319 }
  0x96   :  { %v495_v60 = vpop.eup %494 }
  0x97   :  { %179 = vmatpush.msra.mxu0 %v495_v60  ;;  %470 = vmatpush.msra.mxu3 %v495_v60 }
  0x98   :  { %431 = vmatmul.msk.f32.vlgmr.msra.gmra.mxu0 %vm148_vm0, %v113_v58  ;;  %432 = vmatmul.msk.f32.vlgmr.msra.gmra.mxu3 %vm148_vm0, %v114_v59 }
  0x9c   :  { %v231_v29 = vpop.permute.xlu1 %230 }
  0x9d   :  { %v236_v28 = vpop.permute.xlu0 %235 }
  0xa0   :  { %433 = vmatmul.msk.f32.gmra.mxu3 %vm148_vm0, %v115_v61 }
  0xa4   :  { %v216_v38 = vpop.permute.xlu1 %215 }
  0xa5   :  { %v221_v35 = vpop.permute.xlu0 %220 }
  0xa8   :  { %434 = vmatmul.msk.f32.gmra.mxu3 %vm148_vm0, %v116_v62 }
  0xac   :  { %v315_v54 = vpop.permute.xlu1 %314 }
  0xad   :  { %v310_v52 = vpop.permute.xlu0 %309 }
  0xb0   :  { %435 = vmatmul.msk.f32.gmra.mxu3 %vm148_vm0, %v117_v63 }
  0xb4   :  { %v382_v63 = vpop.permute.xlu1 %381 }
  0xb5   :  { %v325_v61 = vpop.permute.xlu0 %324 }
 0x115   :  { %v181_v11 = vpop.f32.mrf.mxu0 }
 0x116   :  { %v182_v14 = vadd.f32 %v181_v11, %v126_v13  ;;  %v397_v11 = vpop.permute.xlu1 %396 }
 0x11b   :  { %v184_v0 = vpop.f32.mrf.mxu3 }
 0x11c   :  { %v185_v12 = vadd.f32 %v184_v0, %v131_v10 }
 0x123   :  { %v187_v1 = vpop.f32.mrf.mxu3 }
 0x124   :  { %v188_v9 = vadd.f32 %v187_v1, %v136_v8  ;;  %v387_v1 = vpop.permute.xlu2 %386  ;;  %v392_v8 = vpop.permute.xlu0 %391 }
 0x12b   :  { %v190_v2 = vpop.f32.mrf.mxu3 }
 0x12c   :  { %v191_v6 = vadd.f32 %v190_v2, %v141_v4 }
 0x133   :  { %v193_v5 = vpop.f32.mrf.mxu3 }
 0x134   :  { %v194_v7 = vadd.f32 %v193_v5, %v146_v3 }
 0x136   :  { %496 = vtanh.f32 %v194_v7 }
 0x137   :  { %498 = vtanh.f32 %v191_v6 }
 0x138   :  { %500 = vtanh.f32 %v188_v9 }
 0x139   :  { %502 = vtanh.f32 %v185_v12 }
 0x13a   :  { %504 = vtanh.f32 %v182_v14 }
 0x13c   :  { %v497_v15 = vpop.eup %496 }
 0x13d   :  { %264 = vmatpush.msrb.mxu0 %v497_v15  ;;  %471 = vmatpush.msra.mxu1 %v497_v15  ;;  %v499_v16 = vpop.eup %498 }
 0x13e   :  { %v501_v17 = vpop.eup %500 }
 0x13f   :  { %265 = vmatpush.msrb.mxu0 %v499_v16  ;;  %472 = vmatpush.msra.mxu1 %v499_v16  ;;  %v503_v18 = vpop.eup %502  ;;  %v402_v16 = vpop.permute.xlu2 %401 }
 0x140   :  { %v505_v21 = vpop.eup %504 }
 0x141   :  { %266 = vmatpush.msrb.mxu0 %v501_v17  ;;  %473 = vmatpush.msra.mxu1 %v501_v17 }
 0x143   :  { %267 = vmatpush.msrb.mxu0 %v503_v18  ;;  %474 = vmatpush.msra.mxu1 %v503_v18 }
 0x145   :  { %268 = vmatpush.msrb.mxu0 %v505_v21  ;;  %475 = vmatpush.msra.mxu1 %v505_v21 }
 0x146   :  { %446 = vmatmul.msk.f32.vlgmr.msrb.gmra.mxu0 %vm148_vm0, %v436_v19  ;;  %447 = vmatmul.msk.f32.vlgmr.msra.gmra.mxu1 %vm148_vm0, %v437_v20 }
 0x14e   :  { %448 = vmatmul.msk.f32.gmra.mxu1 %vm148_vm0, %v438_v22 }
 0x156   :  { %449 = vmatmul.msk.f32.gmra.mxu1 %vm148_vm0, %v439_v23 }
 0x15e   :  { %450 = vmatmul.msk.f32.gmra.mxu1 %vm148_vm0, %v440_v24  ;;  %v422_v24 = vpop.permute.xlu0 %421 }
 0x1c3   :  { %v273_v25 = vpop.f32.mrf.mxu1  ;;  %v270_v36 = vpop.f32.mrf.mxu0 }
 0x1c4   :  { %v274_v37 = vadd.f32 %v273_v25, %v221_v35  ;;  %v271_v39 = vadd.f32 %v270_v36, %v216_v38 }
 0x1cb   :  { %v276_v26 = vpop.f32.mrf.mxu1 }
 0x1cc   :  { %v277_v34 = vadd.f32 %v276_v26, %v226_v33  ;;  %v424_v26 = vperm.slane %v422_v24, 0 }
 0x1d3   :  { %v279_v27 = vpop.f32.mrf.mxu1 }
 0x1d4   :  { %v280_v31 = vadd.f32 %v279_v27, %v231_v29 }
 0x1db   :  { %v282_v30 = vpop.f32.mrf.mxu1 }
 0x1dc   :  { %v283_v32 = vadd.f32 %v282_v30, %v236_v28 }
 0x1de   :  { %506 = vtanh.f32 %v283_v32 }
 0x1df   :  { %508 = vtanh.f32 %v280_v31 }
 0x1e0   :  { %510 = vtanh.f32 %v277_v34 }
 0x1e1   :  { %512 = vtanh.f32 %v274_v37 }
 0x1e2   :  { %514 = vtanh.f32 %v271_v39 }
 0x1e4   :  { %v507_v40 = vpop.eup %506 }
 0x1e5   :  { %353 = vmatpush.msra.mxu0 %v507_v40  ;;  %476 = vmatpush.msra.mxu2 %v507_v40  ;;  %v509_v41 = vpop.eup %508 }
 0x1e6   :  { %v511_v42 = vpop.eup %510 }
 0x1e7   :  { %354 = vmatpush.msra.mxu0 %v509_v41  ;;  %477 = vmatpush.msra.mxu2 %v509_v41  ;;  %v513_v43 = vpop.eup %512 }
 0x1e8   :  { %v515_v46 = vpop.eup %514 }
 0x1e9   :  { %355 = vmatpush.msra.mxu0 %v511_v42  ;;  %478 = vmatpush.msra.mxu2 %v511_v42 }
 0x1eb   :  { %356 = vmatpush.msra.mxu0 %v513_v43  ;;  %479 = vmatpush.msra.mxu2 %v513_v43 }
 0x1ed   :  { %357 = vmatpush.msra.mxu0 %v515_v46  ;;  %480 = vmatpush.msra.mxu2 %v515_v46 }
 0x1ee   :  { %461 = vmatmul.msk.f32.vlgmr.msra.gmra.mxu0 %vm148_vm0, %v451_v44  ;;  %462 = vmatmul.msk.f32.vlgmr.msra.gmra.mxu2 %vm148_vm0, %v452_v45 }
 0x1f6   :  { %463 = vmatmul.msk.f32.gmra.mxu2 %vm148_vm0, %v453_v47 }
 0x1fe   :  { %464 = vmatmul.msk.f32.gmra.mxu2 %vm148_vm0, %v454_v48 }
 0x206   :  { %465 = vmatmul.msk.f32.gmra.mxu2 %vm148_vm0, %v455_v49 }
 0x26b   :  { %v359_v55 = vpop.f32.mrf.mxu0 }
 0x26c   :  { %v360_v58 = vadd.f32 %v359_v55, %v305_v51 }
 0x271   :  { %v362_v50 = vpop.f32.mrf.mxu2 }
 0x272   :  { %v363_v57 = vadd.f32 %v362_v50, %v310_v52 }
 0x274   :  { %516 = vtanh.f32 %v363_v57 }
 0x275   :  { %518 = vtanh.f32 %v360_v58 }
 0x279   :  { %v365_v53 = vpop.f32.mrf.mxu2 }
 0x27a   :  { %v366_v59 = vadd.f32 %v365_v53, %v315_v54  ;;  %v517_v0 = vpop.eup %516 }
 0x27b   :  { %v519_v2 = vpop.eup %518  ;;  %v405_v6 = vmul.f32 %v517_v0, %v387_v1 }
 0x27c   :  { %520 = vtanh.f32 %v366_v59  ;;  %v404_v9 = vmul.f32 %v519_v2, %v382_v63 }
 0x27e   :  { %v409_v12 = vadd.f32 %v405_v6, %v404_v9 }
 0x281   :  { %v368_v60 = vpop.f32.mrf.mxu2 }
 0x282   :  { %v369_v62 = vadd.f32 %v368_v60, %v320_v56  ;;  %v521_v4 = vpop.eup %520 }
 0x283   :  { %v406_v10 = vmul.f32 %v521_v4, %v392_v8 }
 0x284   :  { %522 = vtanh.f32 %v369_v62 }
 0x285   :  { %v410_v14 = vadd.f32 %v409_v12, %v406_v10 }
 0x289   :  { %v371_v3 = vpop.f32.mrf.mxu2 }
 0x28a   :  { %v372_v5 = vadd.f32 %v371_v3, %v325_v61  ;;  %v523_v7 = vpop.eup %522 }
 0x28b   :  { %v407_v13 = vmul.f32 %v523_v7, %v397_v11 }
 0x28c   :  { %524 = vtanh.f32 %v372_v5 }
 0x28d   :  { %v411_v17 = vadd.f32 %v410_v14, %v407_v13 }
 0x292   :  { %v525_v15 = vpop.eup %524 }
 0x293   :  { %v408_v18 = vmul.f32 %v525_v15, %v402_v16 }
 0x295   :  { %v412_v19 = vadd.f32 %v411_v17, %v408_v18 }
 0x297   :  { %v413_v20 = vrot.slane %v412_v19, 4 }
 0x299   :  { %v414_v21 = vadd.f32 %v413_v20, %v412_v19 }
 0x29b   :  { %v415_v22 = vrot.slane %v414_v21, 2 }
 0x29d   :  { %v416_v23 = vadd.f32 %v415_v22, %v414_v21 }
 0x29f   :  { %v417_v25 = vrot.slane %v416_v23, 1 }
 0x2a1   :  { %v418_v27 = vadd.f32 %v417_v25, %v416_v23 }
 0x2a3   :  { %v425_v28 = vadd.f32 %v424_v26, %v418_v27 }
 0x2a5   :  { %426 = vst [vmem:[%s733_s7] sm:$0x1] %v425_v28 }

</bundles_post_ra>
